<compile_context>
chip_gen: v7x
topology: tpu7x:2x2x1
jax: 0.10.0
libtpu: 0.0.40
codegen_flags: <defaults>
</compile_context>

<pallas_src>
import functools

import jax
import jax.numpy as jnp
from jax.experimental import pallas as pl
from jax.experimental.pallas import tpu as pltpu

EPS = 1e-12


def _round_up(x, m):
    return (x + m - 1) // m * m


def _fused_head_kernel(*refs, n_layers, n_real, n_pad):
    """Fused [Linear -> BatchNorm1d (batch stats) -> (ReLU)] x n_layers.

    refs = (x_ref, w0, g0, b0, w1, g1, b1, ..., w_last, o_ref)
      x_ref : (n_pad, f_in_pad)  bf16      (pre-cast on the wrapper side)
      w_i   : (f_in_pad, f_out_pad) bf16   (padded W.T, zero padded)
      g_i,b_i: (1, f_out_pad) f32          (only for non-final layers)
      o_ref : (n_pad, f_out_pad) f32
    """
    x_ref = refs[0]
    o_ref = refs[-1]
    params = refs[1:-1]

    # Row mask so zero-padded batch rows stay exactly zero going INTO the next
    # layer (their raw matmul output is then zero, so the unmasked sum/sumsq
    # batch statistics are exact without any stats-side masking).
    need_row_mask = n_pad > n_real
    if need_row_mask:
        row_ids = jax.lax.broadcasted_iota(jnp.int32, (n_pad, 1), 0)
        row_mask = (row_ids < n_real).astype(jnp.float32)

    inv_n = jnp.float32(1.0 / n_real)

    h = x_ref[...]  # already bf16: straight into the MXU
    idx = 0
    for i in range(n_layers):
        is_last = i == n_layers - 1

        w = params[idx][...]  # bf16 (f_in_pad, f_out_pad)
        idx += 1

        # MXU matmul in bf16, f32 accumulation.
        y = jnp.dot(h, w, preferred_element_type=jnp.float32)

        # Single-pass BatchNorm1d statistics (training mode, biased variance).
        # Padded rows of y are exactly 0, so dividing the unmasked sums by
        # n_real is correct. Clamp var >= 0 to guard one-pass cancellation.
        s = jnp.sum(y, axis=0, keepdims=True)
        sq = jnp.sum(y * y, axis=0, keepdims=True)
        mean = s * inv_n
        var = jnp.maximum(sq * inv_n - mean * mean, 0.0)
        inv_std = jax.lax.rsqrt(var + EPS)

        if not is_last:
            gamma = params[idx][...]
            beta = params[idx + 1][...]
            idx += 2
            # Whole BN folded into a single (N,F) multiply-add:
            #   (y - mean) * inv_std * gamma + beta  ==  y*scale + shift
            scale = gamma * inv_std        # (1, F) -- zero on padded columns
            shift = beta - mean * scale    # (1, F) -- zero on padded columns
            y = jnp.maximum(y * scale + shift, 0.0)
            if need_row_mask:
                y = y * row_mask  # keep padded rows exactly zero for next layer
            h = y.astype(jnp.bfloat16)
        else:
            # Final layer: BatchNorm without affine.
            scale = inv_std
            shift = -mean * scale
            # Padded rows of the output are garbage (== shift); the wrapper
            # slices them off.
            o_ref[...] = (y * scale + shift).astype(o_ref.dtype)


def _vmem_limit_bytes(operand_bytes):
    """Per-chip VMEM budget: ~70% of physical capacity, never below 16 MiB."""
    try:
        cap = int(getattr(pltpu.get_tpu_info(), "vmem_capacity_bytes", 128 << 20))
    except Exception:  # pragma: no cover - conservative fallback off-TPU
        cap = 128 << 20
    ceiling = int(cap * 0.70)
    want = int(4 * operand_bytes + (2 << 20))  # headroom for intermediates
    return max(min(want, ceiling), 16 << 20)


class ProjectionHeadPallas:
    """JAX/Pallas port of ProjectionHead: `layer` fused Linear+BN(+ReLU) blocks."""

    def __init__(self, in_dim, mid_dim, out_dim, layer, key):
        assert layer >= 1
        self.layer = layer
        self.in_dim = in_dim
        self.out_dim = out_dim
        self.in_dim_pad = _round_up(in_dim, 128)
        self.out_dim_pad = _round_up(out_dim, 128)

        # Kernel-side (padded, bf16) parameters.
        self.weights = []   # (f_in_pad, f_out_pad) bf16  == padded W.T
        self.gammas = []    # (1, f_out_pad) f32 or None
        self.betas = []     # (1, f_out_pad) f32 or None
        # Reference-side (unpadded, f32) copies for validation.
        self.ref_weights_t = []
        self.ref_gammas = []
        self.ref_betas = []

        # Pre-computed matmul flop count per padded batch row (for CostEstimate).
        self._flops_per_row = 0

        for i in range(layer):
            layer_in = mid_dim if i != 0 else in_dim
            layer_out = mid_dim if i != layer - 1 else out_dim
            layer_in_pad = _round_up(layer_in, 128)
            layer_out_pad = _round_up(layer_out, 128)
            self._flops_per_row += 2 * layer_in_pad * layer_out_pad

            key, wk, gk, bk = jax.random.split(key, 4)
            # Deterministic synthetic init (not a checkpoint load).
            w = jax.random.normal(wk, (layer_out, layer_in), jnp.float32) * 0.1
            self.ref_weights_t.append(jnp.asarray(w.T))

            w_t_pad = (
                jnp.zeros((layer_in_pad, layer_out_pad), jnp.float32)
                .at[:layer_in, :layer_out]
                .set(w.T)
            )
            self.weights.append(w_t_pad.astype(jnp.bfloat16))

            if i != layer - 1:
                gamma = 1.0 + 0.01 * jax.random.normal(gk, (1, layer_out), jnp.float32)
                beta = 0.01 * jax.random.normal(bk, (1, layer_out), jnp.float32)
                self.ref_gammas.append(gamma)
                self.ref_betas.append(beta)
                gamma_pad = (
                    jnp.zeros((1, layer_out_pad), jnp.float32)
                    .at[:, :layer_out]
                    .set(gamma)
                )
                beta_pad = (
                    jnp.zeros((1, layer_out_pad), jnp.float32)
                    .at[:, :layer_out]
                    .set(beta)
                )
                self.gammas.append(gamma_pad)
                self.betas.append(beta_pad)
            else:
                self.ref_gammas.append(None)
                self.ref_betas.append(None)
                self.gammas.append(None)
                self.betas.append(None)

    def __call__(self, x, lg_id=0):
        n, f = x.shape
        assert f == self.in_dim
        # bf16 matmul operand: pad batch to a multiple of 16 (full packed
        # sublanes per vreg) instead of 8.
        n_pad = _round_up(n, 16)

        # Fused pad + bf16 cast on the wrapper side: one XLA op, half the
        # input DMA bytes, no in-kernel cast pass. Padded rows/cols are zero.
        x_pad = (
            jnp.zeros((n_pad, self.in_dim_pad), jnp.bfloat16)
            .at[:n, :f]
            .set(x.astype(jnp.bfloat16))
        )

        params = []
        for i in range(self.layer):
            params.append(self.weights[i])
            if self.gammas[i] is not None:
                params.append(self.gammas[i])
                params.append(self.betas[i])

        kernel = functools.partial(
            _fused_head_kernel, n_layers=self.layer, n_real=n, n_pad=n_pad
        )

        vmem_spec = pl.BlockSpec(memory_space=pltpu.MemorySpace.VMEM)

        out_bytes = n_pad * self.out_dim_pad * 4
        operand_bytes = (
            x_pad.size * x_pad.dtype.itemsize
            + sum(p.size * p.dtype.itemsize for p in params)
            + out_bytes
        )
        vmem_limit = _vmem_limit_bytes(operand_bytes)

        cost = pl.CostEstimate(
            flops=int(n_pad * self._flops_per_row),
            transcendentals=int(self.layer * max(self.out_dim_pad, 128)),  # rsqrt per col
            bytes_accessed=int(operand_bytes),
        )

        out_pad = pl.pallas_call(
            kernel,
            out_shape=jax.ShapeDtypeStruct((n_pad, self.out_dim_pad), jnp.float32),
            in_specs=[vmem_spec] * (1 + len(params)),
            out_specs=vmem_spec,
            compiler_params=pltpu.CompilerParams(vmem_limit_bytes=vmem_limit),
            cost_estimate=cost,
        )(x_pad, *params)

        # NOTE: if the consumer can handle the lane-dense padded layout,
        # return out_pad directly and skip this narrow slice-copy.
        return out_pad[:n, : self.out_dim]


def _reference_forward(head, x):
    """Pure-JAX reference matching the module semantics (bf16 matmul to mirror
    the kernel's MXU precision; all BN math in f32)."""
    h = x.astype(jnp.float32)
    for i in range(head.layer):
        w_t = head.ref_weights_t[i]
        y = jnp.dot(
            h.astype(jnp.bfloat16),
            w_t.astype(jnp.bfloat16),
            preferred_element_type=jnp.float32,
        )
        mean = jnp.mean(y, axis=0, keepdims=True)
        var = jnp.mean((y - mean) ** 2, axis=0, keepdims=True)
        y = (y - mean) * jax.lax.rsqrt(var + EPS)
        if i != head.layer - 1:
            y = y * head.ref_gammas[i] + head.ref_betas[i]
            y = jnp.maximum(y, 0.0)
        h = y
    return h


if __name__ == "__main__":
    key = jax.random.PRNGKey(0)
    key, xk, pk = jax.random.split(key, 3)

    # Small shapes consistent with the module's forward: (batch, in_dim).
    # batch=10 deliberately NOT a multiple of 16 to exercise the row-mask path.
    batch, in_dim, mid_dim, out_dim, n_layers = 10, 32, 64, 32, 3
    x = jax.random.normal(xk, (batch, in_dim), jnp.float32)

    head = ProjectionHeadPallas(in_dim, mid_dim, out_dim, n_layers, pk)

    out = head(x)
    out = jax.block_until_ready(out)

    ref = _reference_forward(head, x)
    assert out.shape == (batch, out_dim)
    assert jnp.allclose(out, ref, atol=1e-3, rtol=1e-3)

    print("KERNEL_OK")
</pallas_src>

<mosaic_0001>
module attributes {stable_mosaic.version = 11 : i64} {
  func.func @_fused_head_kernel(%arg0: memref<16x128xbf16, #tpu.memory_space<vmem>>, %arg1: memref<128x128xbf16, #tpu.memory_space<vmem>>, %arg2: memref<1x128xf32, #tpu.memory_space<vmem>>, %arg3: memref<1x128xf32, #tpu.memory_space<vmem>>, %arg4: memref<128x128xbf16, #tpu.memory_space<vmem>>, %arg5: memref<1x128xf32, #tpu.memory_space<vmem>>, %arg6: memref<1x128xf32, #tpu.memory_space<vmem>>, %arg7: memref<128x128xbf16, #tpu.memory_space<vmem>>, %arg8: memref<16x128xf32, #tpu.memory_space<vmem>>) attributes {dimension_semantics = [], scalar_prefetch = 0 : i64, scratch_operands = 0 : i64, tpu.core_type = #tpu.core_type<tc>} {
    %0 = tpu.iota {dimensions = array<i32: 0>} : vector<16x1xi32>
    %c10_i32 = arith.constant 10 : i32
    %1 = vector.broadcast %c10_i32 : i32 to vector<16x1xi32>
    %2 = arith.cmpi slt, %0, %1 : vector<16x1xi32>
    %3 = arith.extui %2 : vector<16x1xi1> to vector<16x1xi32>
    %4 = arith.sitofp %3 : vector<16x1xi32> to vector<16x1xf32>
    %c0 = arith.constant 0 : index
    %c0_0 = arith.constant 0 : index
    %5 = vector.load %arg0[%c0, %c0_0] : memref<16x128xbf16, #tpu.memory_space<vmem>>, vector<16x128xbf16>
    %c0_1 = arith.constant 0 : index
    %c0_2 = arith.constant 0 : index
    %6 = vector.load %arg1[%c0_1, %c0_2] : memref<128x128xbf16, #tpu.memory_space<vmem>>, vector<128x128xbf16>
    %cst = arith.constant dense<0.000000e+00> : vector<16x128xf32>
    %7 = tpu.matmul %5, %6, %cst {dimension_numbers = #tpu.dot_dimension_numbers<[1], [0], [0], [1], [0, 0, 1, 1], [], []>} : vector<16x128xbf16>, vector<128x128xbf16>, vector<16x128xf32> -> vector<16x128xf32>
    %cst_3 = arith.constant dense<0.000000e+00> : vector<128xf32>
    %8 = vector.multi_reduction <add>, %7, %cst_3 [0] : vector<16x128xf32> to vector<128xf32>
    %9 = vector.shape_cast %8 : vector<128xf32> to vector<1x128xf32>
    %10 = arith.mulf %7, %7 : vector<16x128xf32>
    %cst_4 = arith.constant dense<0.000000e+00> : vector<128xf32>
    %11 = vector.multi_reduction <add>, %10, %cst_4 [0] : vector<16x128xf32> to vector<128xf32>
    %12 = vector.shape_cast %11 : vector<128xf32> to vector<1x128xf32>
    %cst_5 = arith.constant 1.000000e-01 : f32
    %13 = vector.broadcast %cst_5 : f32 to vector<1x128xf32>
    %14 = arith.mulf %9, %13 : vector<1x128xf32>
    %cst_6 = arith.constant 1.000000e-01 : f32
    %15 = vector.broadcast %cst_6 : f32 to vector<1x128xf32>
    %16 = arith.mulf %12, %15 : vector<1x128xf32>
    %17 = arith.mulf %14, %14 : vector<1x128xf32>
    %18 = arith.subf %16, %17 : vector<1x128xf32>
    %cst_7 = arith.constant 0.000000e+00 : f32
    %19 = vector.broadcast %cst_7 : f32 to vector<1x128xf32>
    %20 = arith.maximumf %18, %19 : vector<1x128xf32>
    %cst_8 = arith.constant 9.99999996E-13 : f32
    %21 = vector.broadcast %cst_8 : f32 to vector<1x128xf32>
    %22 = arith.addf %20, %21 : vector<1x128xf32>
    %23 = math.rsqrt %22 : vector<1x128xf32>
    %c0_9 = arith.constant 0 : index
    %c0_10 = arith.constant 0 : index
    %24 = vector.load %arg2[%c0_9, %c0_10] : memref<1x128xf32, #tpu.memory_space<vmem>>, vector<1x128xf32>
    %c0_11 = arith.constant 0 : index
    %c0_12 = arith.constant 0 : index
    %25 = vector.load %arg3[%c0_11, %c0_12] : memref<1x128xf32, #tpu.memory_space<vmem>>, vector<1x128xf32>
    %26 = arith.mulf %24, %23 : vector<1x128xf32>
    %27 = arith.mulf %14, %26 : vector<1x128xf32>
    %28 = arith.subf %25, %27 : vector<1x128xf32>
    %29 = vector.broadcast %26 : vector<1x128xf32> to vector<16x128xf32>
    %30 = arith.mulf %7, %29 : vector<16x128xf32>
    %31 = vector.broadcast %28 : vector<1x128xf32> to vector<16x128xf32>
    %32 = arith.addf %30, %31 : vector<16x128xf32>
    %cst_13 = arith.constant 0.000000e+00 : f32
    %33 = vector.broadcast %cst_13 : f32 to vector<16x128xf32>
    %34 = arith.maximumf %32, %33 : vector<16x128xf32>
    %35 = vector.broadcast %4 : vector<16x1xf32> to vector<16x128xf32>
    %36 = arith.mulf %34, %35 : vector<16x128xf32>
    %37 = arith.truncf %36 : vector<16x128xf32> to vector<16x128xbf16>
    %c0_14 = arith.constant 0 : index
    %c0_15 = arith.constant 0 : index
    %38 = vector.load %arg4[%c0_14, %c0_15] : memref<128x128xbf16, #tpu.memory_space<vmem>>, vector<128x128xbf16>
    %cst_16 = arith.constant dense<0.000000e+00> : vector<16x128xf32>
    %39 = tpu.matmul %37, %38, %cst_16 {dimension_numbers = #tpu.dot_dimension_numbers<[1], [0], [0], [1], [0, 0, 1, 1], [], []>} : vector<16x128xbf16>, vector<128x128xbf16>, vector<16x128xf32> -> vector<16x128xf32>
    %cst_17 = arith.constant dense<0.000000e+00> : vector<128xf32>
    %40 = vector.multi_reduction <add>, %39, %cst_17 [0] : vector<16x128xf32> to vector<128xf32>
    %41 = vector.shape_cast %40 : vector<128xf32> to vector<1x128xf32>
    %42 = arith.mulf %39, %39 : vector<16x128xf32>
    %cst_18 = arith.constant dense<0.000000e+00> : vector<128xf32>
    %43 = vector.multi_reduction <add>, %42, %cst_18 [0] : vector<16x128xf32> to vector<128xf32>
    %44 = vector.shape_cast %43 : vector<128xf32> to vector<1x128xf32>
    %cst_19 = arith.constant 1.000000e-01 : f32
    %45 = vector.broadcast %cst_19 : f32 to vector<1x128xf32>
    %46 = arith.mulf %41, %45 : vector<1x128xf32>
    %cst_20 = arith.constant 1.000000e-01 : f32
    %47 = vector.broadcast %cst_20 : f32 to vector<1x128xf32>
    %48 = arith.mulf %44, %47 : vector<1x128xf32>
    %49 = arith.mulf %46, %46 : vector<1x128xf32>
    %50 = arith.subf %48, %49 : vector<1x128xf32>
    %cst_21 = arith.constant 0.000000e+00 : f32
    %51 = vector.broadcast %cst_21 : f32 to vector<1x128xf32>
    %52 = arith.maximumf %50, %51 : vector<1x128xf32>
    %cst_22 = arith.constant 9.99999996E-13 : f32
    %53 = vector.broadcast %cst_22 : f32 to vector<1x128xf32>
    %54 = arith.addf %52, %53 : vector<1x128xf32>
    %55 = math.rsqrt %54 : vector<1x128xf32>
    %c0_23 = arith.constant 0 : index
    %c0_24 = arith.constant 0 : index
    %56 = vector.load %arg5[%c0_23, %c0_24] : memref<1x128xf32, #tpu.memory_space<vmem>>, vector<1x128xf32>
    %c0_25 = arith.constant 0 : index
    %c0_26 = arith.constant 0 : index
    %57 = vector.load %arg6[%c0_25, %c0_26] : memref<1x128xf32, #tpu.memory_space<vmem>>, vector<1x128xf32>
    %58 = arith.mulf %56, %55 : vector<1x128xf32>
    %59 = arith.mulf %46, %58 : vector<1x128xf32>
    %60 = arith.subf %57, %59 : vector<1x128xf32>
    %61 = vector.broadcast %58 : vector<1x128xf32> to vector<16x128xf32>
    %62 = arith.mulf %39, %61 : vector<16x128xf32>
    %63 = vector.broadcast %60 : vector<1x128xf32> to vector<16x128xf32>
    %64 = arith.addf %62, %63 : vector<16x128xf32>
    %cst_27 = arith.constant 0.000000e+00 : f32
    %65 = vector.broadcast %cst_27 : f32 to vector<16x128xf32>
    %66 = arith.maximumf %64, %65 : vector<16x128xf32>
    %67 = vector.broadcast %4 : vector<16x1xf32> to vector<16x128xf32>
    %68 = arith.mulf %66, %67 : vector<16x128xf32>
    %69 = arith.truncf %68 : vector<16x128xf32> to vector<16x128xbf16>
    %c0_28 = arith.constant 0 : index
    %c0_29 = arith.constant 0 : index
    %70 = vector.load %arg7[%c0_28, %c0_29] : memref<128x128xbf16, #tpu.memory_space<vmem>>, vector<128x128xbf16>
    %cst_30 = arith.constant dense<0.000000e+00> : vector<16x128xf32>
    %71 = tpu.matmul %69, %70, %cst_30 {dimension_numbers = #tpu.dot_dimension_numbers<[1], [0], [0], [1], [0, 0, 1, 1], [], []>} : vector<16x128xbf16>, vector<128x128xbf16>, vector<16x128xf32> -> vector<16x128xf32>
    %cst_31 = arith.constant dense<0.000000e+00> : vector<128xf32>
    %72 = vector.multi_reduction <add>, %71, %cst_31 [0] : vector<16x128xf32> to vector<128xf32>
    %73 = vector.shape_cast %72 : vector<128xf32> to vector<1x128xf32>
    %74 = arith.mulf %71, %71 : vector<16x128xf32>
    %cst_32 = arith.constant dense<0.000000e+00> : vector<128xf32>
    %75 = vector.multi_reduction <add>, %74, %cst_32 [0] : vector<16x128xf32> to vector<128xf32>
    %76 = vector.shape_cast %75 : vector<128xf32> to vector<1x128xf32>
    %cst_33 = arith.constant 1.000000e-01 : f32
    %77 = vector.broadcast %cst_33 : f32 to vector<1x128xf32>
    %78 = arith.mulf %73, %77 : vector<1x128xf32>
    %cst_34 = arith.constant 1.000000e-01 : f32
    %79 = vector.broadcast %cst_34 : f32 to vector<1x128xf32>
    %80 = arith.mulf %76, %79 : vector<1x128xf32>
    %81 = arith.mulf %78, %78 : vector<1x128xf32>
    %82 = arith.subf %80, %81 : vector<1x128xf32>
    %cst_35 = arith.constant 0.000000e+00 : f32
    %83 = vector.broadcast %cst_35 : f32 to vector<1x128xf32>
    %84 = arith.maximumf %82, %83 : vector<1x128xf32>
    %cst_36 = arith.constant 9.99999996E-13 : f32
    %85 = vector.broadcast %cst_36 : f32 to vector<1x128xf32>
    %86 = arith.addf %84, %85 : vector<1x128xf32>
    %87 = math.rsqrt %86 : vector<1x128xf32>
    %cst_37 = arith.constant 0.000000e+00 : f32
    %88 = vector.broadcast %cst_37 : f32 to vector<1x128xf32>
    %89 = arith.subf %88, %78 : vector<1x128xf32>
    %90 = arith.mulf %89, %87 : vector<1x128xf32>
    %91 = vector.broadcast %87 : vector<1x128xf32> to vector<16x128xf32>
    %92 = arith.mulf %71, %91 : vector<16x128xf32>
    %93 = vector.broadcast %90 : vector<1x128xf32> to vector<16x128xf32>
    %94 = arith.addf %92, %93 : vector<16x128xf32>
    %c0_38 = arith.constant 0 : index
    %c0_39 = arith.constant 0 : index
    %95 = vector.load %arg8[%c0_38, %c0_39] : memref<16x128xf32, #tpu.memory_space<vmem>>, vector<16x128xf32>
    tpu.vector_store %arg8[%c0_38, %c0_39], %94 {strides = array<i32>} : memref<16x128xf32, #tpu.memory_space<vmem>>, vector<16x128xf32>,
    return
  }
}

</mosaic_0001>

<bundles_post_ra>
// kernel: tpu_custom_call.1
= control target key start
LH: loop header
LB: loop body
LE: loop exit
PB: predicated region body
PF: predicated region fallthrough
CT: control target
= control target key end

     0   :  { %13 = vsyncpa [#allocation3], 0  ;;  %s1034_s0 = inlined_call_operand.hbm [shape: bf16[16,128], index: 0, kind: input, shape index: {}]   ;;  %s1035_s1 = inlined_call_operand.hbm [shape: bf16[128,128], index: 1, kind: input, shape index: {}]   ;;  %s1036_s2 = inlined_call_operand.vmem [shape: f32[1,128], index: 2, kind: input, shape index: {}]   ;;  %s1037_s3 = inlined_call_operand.vmem [shape: f32[1,128], index: 3, kind: input, shape index: {}]   ;;  %s1038_s4 = inlined_call_operand.hbm [shape: bf16[128,128], index: 4, kind: input, shape index: {}]   ;;  %s1039_s5 = inlined_call_operand.vmem [shape: f32[1,128], index: 5, kind: input, shape index: {}]   ;;  %s1040_s6 = inlined_call_operand.vmem [shape: f32[1,128], index: 6, kind: input, shape index: {}]   ;;  %s1041_s7 = inlined_call_operand.hbm [shape: bf16[128,128], index: 7, kind: input, shape index: {}]   ;;  %s1042_s8 = inlined_call_operand.hbm [shape: f32[16,128], index: 8, kind: output, shape index: {}]  }
   0x1   :  { %14 = vsyncpa [#allocation6], 0 }
   0x2   :  { %15 = vsyncpa [#allocation9], 0 }
   0x3   :  { %16 = vsyncpa [#allocation4], 0  ;;  %s839_s27 = smov [#allocation5]   ;;  %s840_s29 = smov [#allocation2]  }
   0x4   :  { %s34_s28 = sshll.u32 %s839_s27, 4  ;;  %s22_s30 = sshll.u32 %s840_s29, 4  ;;  %s35_s28 = int_to_ptr.vmem [resolvable:$true] %s34_s28  ;;  %s895_s30 = int_to_ptr.vmem [resolvable:$true] %s22_s30 }
   0x5   :  { %s721_s11 = scalar_lea.hbm %s1035_s1, 1024 }
   0x6   :  { %p722_p0 = scmp.ne.s32.totalorder %s1035_s1, %s721_s11  ;;  %p725_p1 = scmp.lt.u32.totalorder %s721_s11, %s1035_s1 }
   0x8   :  { %p727_p2 = pnand %p725_p1, %p722_p0 }
   0xa   :  { %730 = shalt.err (!%p727_p2)
}
   0xb   :  { %s731_s16 = scalar_lea.vmem %s35_s28, 1024  ;;  %p736_p4 = scmp.lt.s32.totalorder %s35_s28, %s35_s28 }
   0xc   :  { %p732_p3 = scmp.ne.s32.totalorder %s35_s28, %s731_s16  ;;  %p737_p5 = scmp.lt.s32.totalorder %s731_s16, %s731_s16 }
   0xe   :  { %p738_p6 = por %p737_p5, %p736_p4 }
  0x10   :  { %p739_p7 = pnand %p738_p6, %p732_p3 }
  0x12   :  { %742 = shalt.err (!%p739_p7)
}
  0x13   :  { %s841_s17 = smov 64   ;;  %s842_s18 = smov 4  }
  0x14   :  { %40 = dma.hbm_to_vmem [thread:$0]  %s1035_s1, 1024, %s35_s28, [#allocation6], %s841_s17, %s841_s17, %s842_s18  }
  0x15   :  { %s743_s23 = scalar_lea.hbm %s1034_s0, 128 }
  0x16   :  { %p744_p8 = scmp.ne.s32.totalorder %s1034_s0, %s743_s23  ;;  %p747_p9 = scmp.lt.u32.totalorder %s743_s23, %s1034_s0 }
  0x18   :  { %p749_p10 = pnand %p747_p9, %p744_p8 }
  0x1a   :  { %752 = shalt.err (!%p749_p10)
}
  0x1b   :  { %s753_s29 = scalar_lea.vmem %s895_s30, 128  ;;  %p758_p12 = scmp.lt.s32.totalorder %s895_s30, %s895_s30 }
  0x1c   :  { %p754_p11 = scmp.ne.s32.totalorder %s895_s30, %s753_s29  ;;  %p759_p13 = scmp.lt.s32.totalorder %s753_s29, %s753_s29 }
  0x1e   :  { %p760_p0 = por %p759_p13, %p758_p12 }
  0x20   :  { %p761_p1 = pnand %p760_p0, %p754_p11 }
  0x22   :  { %764 = shalt.err (!%p761_p1)
}
  0x23   :  { %28 = dma.hbm_to_vmem [thread:$0]  %s1034_s0, 128, %s895_s30, [#allocation3], %s841_s17, %s841_s17, %s842_s18  }
  0x24   :  { %s843_s9 = smov [#allocation7]   ;;  %s844_s11 = smov [#allocation8]  }
  0x25   :  { %s50_s10 = sshll.u32 %s843_s9, 4  ;;  %s66_s12 = sshll.u32 %s844_s11, 4  ;;  %s51_s10 = int_to_ptr.vmem [resolvable:$true] %s50_s10  ;;  %s932_s12 = int_to_ptr.vmem [resolvable:$true] %s66_s12 }
  0x26   :  { %s765_s15 = scalar_lea.hbm %s1038_s4, 1024 }
  0x27   :  { %p766_p2 = scmp.ne.s32.totalorder %s1038_s4, %s765_s15  ;;  %p769_p3 = scmp.lt.u32.totalorder %s765_s15, %s1038_s4 }
  0x29   :  { %p771_p4 = pnand %p769_p3, %p766_p2 }
  0x2b   :  { %774 = shalt.err (!%p771_p4)
}
  0x2c   :  { %s775_s0 = scalar_lea.vmem %s51_s10, 1024  ;;  %p780_p6 = scmp.lt.s32.totalorder %s51_s10, %s51_s10 }
  0x2d   :  { %p776_p5 = scmp.ne.s32.totalorder %s51_s10, %s775_s0  ;;  %p781_p7 = scmp.lt.s32.totalorder %s775_s0, %s775_s0 }
  0x2f   :  { %p782_p8 = por %p781_p7, %p780_p6 }
  0x31   :  { %p783_p9 = pnand %p782_p8, %p776_p5 }
  0x33   :  { %786 = shalt.err (!%p783_p9)
}
  0x34   :  { %56 = dma.hbm_to_vmem [thread:$0]  %s1038_s4, 1024, %s51_s10, [#allocation6], %s841_s17, %s841_s17, %s842_s18  }
  0x35   :  { %s787_s25 = scalar_lea.hbm %s1041_s7, 1024 }
  0x36   :  { %p788_p10 = scmp.ne.s32.totalorder %s1041_s7, %s787_s25  ;;  %p791_p11 = scmp.lt.u32.totalorder %s787_s25, %s1041_s7 }
  0x38   :  { %p793_p12 = pnand %p791_p11, %p788_p10 }
  0x3a   :  { %796 = shalt.err (!%p793_p12)
}
  0x3b   :  { %s797_s28 = scalar_lea.vmem %s932_s12, 1024  ;;  %p802_p0 = scmp.lt.s32.totalorder %s932_s12, %s932_s12 }
  0x3c   :  { %p798_p13 = scmp.ne.s32.totalorder %s932_s12, %s797_s28  ;;  %p803_p1 = scmp.lt.s32.totalorder %s797_s28, %s797_s28 }
  0x3e   :  { %p804_p2 = por %p803_p1, %p802_p0 }
  0x40   :  { %p805_p3 = pnand %p804_p2, %p798_p13 }
  0x42   :  { %808 = shalt.err (!%p805_p3)
}
  0x43   :  { %72 = dma.hbm_to_vmem [thread:$0]  %s1041_s7, 1024, %s932_s12, [#allocation9], %s841_s17, %s841_s17, %s842_s18  }
  0x44   :  { %831 = dma.done.wait [#allocation3], 128  }
  0x45   :  { %832 = vsyncadd [#allocation3], 4294967168 }
  0x46   :  { %833 = dma.done.wait [#allocation6], 2048  }
  0x47   :  { %834 = vsyncadd [#allocation6], 4294965248 }
  0x48   :  { %835 = dma.done.wait [#allocation9], 1024  }
  0x49   :  { %836 = vsyncadd [#allocation9], 4294966272  ;;  %v845_v0 = vmov 0.0   ;;  %vm846_vm0 = vmmov 0   ;;  %v690_v1 = vld [vmem:[#allocation5] sm:$0xff]   ;;  %v691_v2 = vld [vmem:[#allocation5 + $0x8] sm:$0xff]   ;;  %v86_v44 = vlaneseq }
  0x4a   :  { %619 = vmatprep.subr.bf16.mxu0 %v845_v0  ;;  %635 = vmatprep.mubr.msk.bf16.mxu0 %vm846_vm0, %v845_v0  ;;  %v692_v3 = vld [vmem:[#allocation5 + $0x10] sm:$0xff]   ;;  %v693_v4 = vld [vmem:[#allocation5 + $0x18] sm:$0xff]   ;;  %v694_v5 = vld [vmem:[#allocation5 + $0x20] sm:$0xff]  }
  0x4b   :  { %639 = vmatprep.subr.bf16.mxu1 %v845_v0  ;;  %655 = vmatprep.mubr.msk.bf16.mxu1 %vm846_vm0, %v845_v0  ;;  %v695_v6 = vld [vmem:[#allocation5 + $0x28] sm:$0xff]   ;;  %v696_v7 = vld [vmem:[#allocation5 + $0x30] sm:$0xff]   ;;  %v697_v8 = vld [vmem:[#allocation5 + $0x38] sm:$0xff]   ;;  %v87_v45 = vshrl.u32 %v86_v44, 7 }
  0x4c   :  { %620 = vmatpush3.bf16.msra.mxu0 %v690_v1  ;;  %v698_v9 = vld [vmem:[#allocation2] sm:$0xff]   ;;  %v699_v10 = vld [vmem:[#allocation7] sm:$0xff]   ;;  %v700_v11 = vld [vmem:[#allocation7 + $0x8] sm:$0xff]  }
  0x4d   :  { %621 = vmatprep.subr.bf16.mxu0 %v845_v0  ;;  %640 = vmatpush3.bf16.msra.mxu1 %v699_v10  ;;  %v701_v12 = vld [vmem:[#allocation7 + $0x10] sm:$0xff]   ;;  %v702_v13 = vld [vmem:[#allocation7 + $0x18] sm:$0xff]   ;;  %v703_v14 = vld [vmem:[#allocation7 + $0x20] sm:$0xff]   ;;  %v995_v47 = vsub.s32 0, %v87_v45  ;;  %v88_v53 = vadd.s32 8, %v87_v45 }
  0x4e   :  { %641 = vmatprep.subr.bf16.mxu1 %v845_v0  ;;  %v704_v15 = vld [vmem:[#allocation7 + $0x28] sm:$0xff]   ;;  %v705_v16 = vld [vmem:[#allocation7 + $0x30] sm:$0xff]   ;;  %v706_v17 = vld [vmem:[#allocation7 + $0x38] sm:$0xff]  }
  0x4f   :  { %v231_v46 = vld [vmem:[%s1036_s2] sm:$0x1]  ;;  %vm90_vm1 = vcmp.lt.s32.totalorder %v88_v53, 10 }
  0x50   :  { %622 = vmatpush3.bf16.msra.mxu0 %v691_v2  ;;  %v232_v50 = vld [vmem:[%s1037_s3] sm:$0x1]  ;;  %v1003_v60 = vsel %vm90_vm1, 1.0, %v845_v0  ;;  %v707_v2 = vld [vmem:[#allocation8] sm:$0xff]  }
  0x51   :  { %623 = vmatprep.subr.bf16.mxu0 %v845_v0  ;;  %642 = vmatpush3.bf16.msra.mxu1 %v700_v11 }
  0x52   :  { %643 = vmatprep.subr.bf16.mxu1 %v845_v0 }
  0x54   :  { %624 = vmatpush3.bf16.msra.mxu0 %v692_v3  ;;  %v708_v3 = vld [vmem:[#allocation8 + $0x8] sm:$0xff]  }
  0x55   :  { %625 = vmatprep.subr.bf16.mxu0 %v845_v0  ;;  %644 = vmatpush3.bf16.msra.mxu1 %v701_v12 }
  0x56   :  { %645 = vmatprep.subr.bf16.mxu1 %v845_v0 }
  0x58   :  { %626 = vmatpush3.bf16.msra.mxu0 %v693_v4  ;;  %v709_v4 = vld [vmem:[#allocation8 + $0x10] sm:$0xff]  }
  0x59   :  { %627 = vmatprep.subr.bf16.mxu0 %v845_v0  ;;  %646 = vmatpush3.bf16.msra.mxu1 %v702_v13 }
  0x5a   :  { %647 = vmatprep.subr.bf16.mxu1 %v845_v0 }
  0x5c   :  { %628 = vmatpush3.bf16.msra.mxu0 %v694_v5  ;;  %v710_v5 = vld [vmem:[#allocation8 + $0x18] sm:$0xff]  }
  0x5d   :  { %629 = vmatprep.subr.bf16.mxu0 %v845_v0  ;;  %648 = vmatpush3.bf16.msra.mxu1 %v703_v14 }
  0x5e   :  { %649 = vmatprep.subr.bf16.mxu1 %v845_v0 }
  0x60   :  { %630 = vmatpush3.bf16.msra.mxu0 %v695_v6  ;;  %v711_v6 = vld [vmem:[#allocation8 + $0x20] sm:$0xff]  }
  0x61   :  { %631 = vmatprep.subr.bf16.mxu0 %v845_v0  ;;  %650 = vmatpush3.bf16.msra.mxu1 %v704_v15 }
  0x62   :  { %651 = vmatprep.subr.bf16.mxu1 %v845_v0 }
  0x64   :  { %632 = vmatpush3.bf16.msra.mxu0 %v696_v7  ;;  %v712_v7 = vld [vmem:[#allocation8 + $0x28] sm:$0xff]  }
  0x65   :  { %633 = vmatprep.subr.bf16.mxu0 %v845_v0  ;;  %652 = vmatpush3.bf16.msra.mxu1 %v705_v16 }
  0x66   :  { %653 = vmatprep.subr.bf16.mxu1 %v845_v0 }
  0x68   :  { %634 = vmatpush3.bf16.msra.mxu0 %v697_v8  ;;  %v713_v8 = vld [vmem:[#allocation8 + $0x30] sm:$0xff]  }
  0x69   :  { %659 = vmatprep.subr.bf16.mxu0 %v845_v0  ;;  %654 = vmatpush3.bf16.msra.mxu1 %v706_v17 }
  0x6b   :  { %636 = vmatmul.mubr.bf16.vlgmr.msra.gmra.mrb[0].mxu0 %v698_v9  ;;  %v714_v9 = vld [vmem:[#allocation8 + $0x38] sm:$0xff]  }
  0x6c   :  { %675 = vmatprep.mubr.msk.bf16.mxu0 %vm846_vm0, %v845_v0  ;;  %660 = vmatpush3.bf16.msra.mxu0 %v707_v2 }
  0x6d   :  { %661 = vmatprep.subr.bf16.mxu0 %v845_v0 }
  0x70   :  { %662 = vmatpush3.bf16.msra.mxu0 %v708_v3 }
  0x71   :  { %663 = vmatprep.subr.bf16.mxu0 %v845_v0 }
  0x74   :  { %664 = vmatpush3.bf16.msra.mxu0 %v709_v4 }
  0x75   :  { %665 = vmatprep.subr.bf16.mxu0 %v845_v0 }
  0x78   :  { %666 = vmatpush3.bf16.msra.mxu0 %v710_v5 }
  0x79   :  { %667 = vmatprep.subr.bf16.mxu0 %v845_v0 }
  0x7c   :  { %668 = vmatpush3.bf16.msra.mxu0 %v711_v6 }
  0x7d   :  { %669 = vmatprep.subr.bf16.mxu0 %v845_v0 }
  0x80   :  { %670 = vmatpush3.bf16.msra.mxu0 %v712_v7 }
  0x81   :  { %671 = vmatprep.subr.bf16.mxu0 %v845_v0 }
  0x84   :  { %672 = vmatpush3.bf16.msra.mxu0 %v713_v8 }
  0x85   :  { %673 = vmatprep.subr.bf16.mxu0 %v845_v0 }
  0x88   :  { %674 = vmatpush3.bf16.msra.mxu0 %v714_v9 }
 0x13e   :  { %v201_v18 = vpop.f32.mrb[0].mxu0 }
 0x13f   :  { %v637_v19 = vpop.f32.mrb[1].mxu0  ;;  %v215_v21 = vmul.f32 %v201_v18, %v201_v18 }
 0x140   :  { %v204_v20 = vpop.f32.mrb[2].mxu0 }
 0x141   :  { %v208_v22 = vadd.f32 %v204_v20, %v201_v18  ;;  %v216_v23 = vmul.f32 %v204_v20, %v204_v20  ;;  %v638_v24 = vpop.f32.mrb[3].mxu0 }
 0x143   :  { %v209_v25 = vrot.slane %v208_v22, 4  ;;  %v217_v26 = vadd.f32 %v216_v23, %v215_v21 }
 0x145   :  { %v210_v27 = vadd.f32 %v209_v25, %v208_v22  ;;  %v218_v28 = vrot.slane %v217_v26, 4 }
 0x147   :  { %v211_v29 = vrot.slane %v210_v27, 2  ;;  %v219_v30 = vadd.f32 %v218_v28, %v217_v26 }
 0x149   :  { %v212_v31 = vadd.f32 %v211_v29, %v210_v27  ;;  %v220_v32 = vrot.slane %v219_v30, 2 }
 0x14b   :  { %v213_v33 = vrot.slane %v212_v31, 1  ;;  %v221_v34 = vadd.f32 %v220_v32, %v219_v30 }
 0x14d   :  { %v214_v35 = vadd.f32 %v213_v33, %v212_v31  ;;  %v222_v36 = vrot.slane %v221_v34, 1 }
 0x14f   :  { %v223_v37 = vadd.f32 %v222_v36, %v221_v34  ;;  %v224_v38 = vmul.f32 0.1, %v214_v35  ;;  %v385_v35 = vld [vmem:[%s1039_s5] sm:$0x1]  ;;  %s847_s5 = smov [#allocation10]  }
 0x151   :  { %v225_v39 = vmul.f32 0.1, %v223_v37  ;;  %v226_v40 = vmul.f32 %v224_v38, %v224_v38 }
 0x153   :  { %v227_v41 = vsub.f32 %v225_v39, %v226_v40 }
 0x155   :  { %v228_v42 = vmax.f32 %v227_v41, 0.0 }
 0x157   :  { %v229_v43 = vadd.f32 1e-12, %v228_v42 }
 0x159   :  { %715 = vrsqrt.f32 %v229_v43 }
 0x163   :  { %v716_v48 = vpop.eup %715 }
 0x164   :  { %v233_v49 = vmul.f32 %v716_v48, %v231_v46 }
 0x166   :  { %v234_v51 = vmul.f32 %v233_v49, %v224_v38  ;;  %v240_v52 = vrot.slane %v233_v49, %v995_v47  ;;  %v386_v38 = vld [vmem:[%s1040_s6] sm:$0x1]  ;;  %s552_s6 = sshll.u32 %s847_s5, 4  ;;  %s553_s6 = int_to_ptr.vmem [resolvable:$true] %s552_s6 }
 0x167   :  { %s809_s13 = scalar_lea.vmem %s553_s6, 256  ;;  %p814_p5 = scmp.lt.s32.totalorder %s553_s6, %s553_s6 }
 0x168   :  { %v235_v54 = vsub.f32 %v232_v50, %v234_v51  ;;  %v242_v55 = vmul.f32 %v240_v52, %v201_v18  ;;  %v243_v56 = vmul.f32 %v240_v52, %v204_v20  ;;  %p810_p4 = scmp.ne.s32.totalorder %s553_s6, %s809_s13  ;;  %p815_p6 = scmp.lt.s32.totalorder %s809_s13, %s809_s13 }
 0x16a   :  { %v248_v57 = vrot.slane %v235_v54, %v995_v47  ;;  %p816_p7 = por %p815_p6, %p814_p5 }
 0x16c   :  { %v251_v58 = vadd.f32 %v248_v57, %v243_v56  ;;  %v250_v59 = vadd.f32 %v248_v57, %v242_v55  ;;  %p817_p8 = pnand %p816_p7, %p810_p4 }
 0x16e   :  { %v253_v61 = vmax.f32 %v251_v58, 0.0  ;;  %v252_v62 = vmax.f32 %v250_v59, 0.0 }
 0x170   :  { %v255_v63 = vmul.f32 %v1003_v60, %v253_v61 }
 0x172   :  { %v256_v1 = vpack.c.bf16 %v255_v63, %v252_v62 }
 0x174   :  { %656 = vmatmul.mubr.bf16.vlgmr.msra.gmra.mrb[0].mxu1 %v256_v1 }
 0x247   :  { %v355_v10 = vpop.f32.mrb[0].mxu1 }
 0x248   :  { %v657_v11 = vpop.f32.mrb[1].mxu1  ;;  %v369_v13 = vmul.f32 %v355_v10, %v355_v10 }
 0x249   :  { %v358_v12 = vpop.f32.mrb[2].mxu1 }
 0x24a   :  { %v362_v14 = vadd.f32 %v358_v12, %v355_v10  ;;  %v370_v15 = vmul.f32 %v358_v12, %v358_v12  ;;  %v658_v16 = vpop.f32.mrb[3].mxu1 }
 0x24c   :  { %v363_v17 = vrot.slane %v362_v14, 4  ;;  %v371_v18 = vadd.f32 %v370_v15, %v369_v13 }
 0x24e   :  { %v364_v19 = vadd.f32 %v363_v17, %v362_v14  ;;  %v372_v20 = vrot.slane %v371_v18, 4 }
 0x250   :  { %v365_v21 = vrot.slane %v364_v19, 2  ;;  %v373_v22 = vadd.f32 %v372_v20, %v371_v18 }
 0x252   :  { %v366_v23 = vadd.f32 %v365_v21, %v364_v19  ;;  %v374_v24 = vrot.slane %v373_v22, 2 }
 0x254   :  { %v367_v25 = vrot.slane %v366_v23, 1  ;;  %v375_v26 = vadd.f32 %v374_v24, %v373_v22 }
 0x256   :  { %v368_v0 = vadd.f32 %v367_v25, %v366_v23  ;;  %v376_v27 = vrot.slane %v375_v26, 1 }
 0x258   :  { %v377_v28 = vadd.f32 %v376_v27, %v375_v26  ;;  %v378_v29 = vmul.f32 0.1, %v368_v0 }
 0x25a   :  { %v379_v30 = vmul.f32 0.1, %v377_v28  ;;  %v380_v31 = vmul.f32 %v378_v29, %v378_v29 }
 0x25c   :  { %v381_v32 = vsub.f32 %v379_v30, %v380_v31 }
 0x25e   :  { %v382_v33 = vmax.f32 %v381_v32, 0.0 }
 0x260   :  { %v383_v34 = vadd.f32 1e-12, %v382_v33 }
 0x262   :  { %717 = vrsqrt.f32 %v383_v34 }
 0x26c   :  { %v718_v36 = vpop.eup %717 }
 0x26d   :  { %v387_v37 = vmul.f32 %v718_v36, %v385_v35 }
 0x26f   :  { %v388_v39 = vmul.f32 %v387_v37, %v378_v29  ;;  %v394_v40 = vrot.slane %v387_v37, %v995_v47 }
 0x271   :  { %v389_v41 = vsub.f32 %v386_v38, %v388_v39  ;;  %v396_v42 = vmul.f32 %v394_v40, %v355_v10  ;;  %v397_v43 = vmul.f32 %v394_v40, %v358_v12 }
 0x273   :  { %v402_v44 = vrot.slane %v389_v41, %v995_v47 }
 0x275   :  { %v404_v45 = vadd.f32 %v402_v44, %v396_v42  ;;  %v405_v46 = vadd.f32 %v402_v44, %v397_v43 }
 0x277   :  { %v407_v48 = vmax.f32 %v405_v46, 0.0  ;;  %v406_v50 = vmax.f32 %v404_v45, 0.0 }
 0x279   :  { %v409_v49 = vmul.f32 %v1003_v60, %v407_v48 }
 0x27b   :  { %v410_v51 = vpack.c.bf16 %v409_v49, %v406_v50 }
 0x27d   :  { %676 = vmatmul.mubr.bf16.vlgmr.msra.gmra.mrb[4].mxu0 %v410_v51 }
 0x350   :  { %v509_v52 = vpop.f32.mrb[4].mxu0 }
 0x351   :  { %v677_v53 = vpop.f32.mrb[5].mxu0  ;;  %v523_v55 = vmul.f32 %v509_v52, %v509_v52 }
 0x352   :  { %v512_v54 = vpop.f32.mrb[6].mxu0 }
 0x353   :  { %v516_v56 = vadd.f32 %v512_v54, %v509_v52  ;;  %v524_v57 = vmul.f32 %v512_v54, %v512_v54  ;;  %v678_v58 = vpop.f32.mrb[7].mxu0 }
 0x355   :  { %v517_v59 = vrot.slane %v516_v56, 4  ;;  %v525_v61 = vadd.f32 %v524_v57, %v523_v55 }
 0x357   :  { %v518_v62 = vadd.f32 %v517_v59, %v516_v56  ;;  %v526_v63 = vrot.slane %v525_v61, 4 }
 0x359   :  { %v519_v47 = vrot.slane %v518_v62, 2  ;;  %v527_v1 = vadd.f32 %v526_v63, %v525_v61 }
 0x35b   :  { %v520_v2 = vadd.f32 %v519_v47, %v518_v62  ;;  %v528_v3 = vrot.slane %v527_v1, 2 }
 0x35d   :  { %v521_v4 = vrot.slane %v520_v2, 1  ;;  %v529_v60 = vadd.f32 %v528_v3, %v527_v1 }
 0x35f   :  { %v522_v5 = vadd.f32 %v521_v4, %v520_v2  ;;  %v530_v6 = vrot.slane %v529_v60, 1 }
 0x361   :  { %v531_v7 = vadd.f32 %v530_v6, %v529_v60  ;;  %v532_v8 = vmul.f32 0.1, %v522_v5 }
 0x363   :  { %v533_v9 = vmul.f32 0.1, %v531_v7  ;;  %v534_v10 = vmul.f32 %v532_v8, %v532_v8  ;;  %v539_v14 = vsub.f32 0.0, %v532_v8 }
 0x365   :  { %v535_v11 = vsub.f32 %v533_v9, %v534_v10 }
 0x367   :  { %v536_v12 = vmax.f32 %v535_v11, 0.0 }
 0x369   :  { %v537_v13 = vadd.f32 1e-12, %v536_v12 }
 0x36b   :  { %719 = vrsqrt.f32 %v537_v13 }
 0x375   :  { %v720_v15 = vpop.eup %719 }
 0x376   :  { %v540_v16 = vmul.f32 %v720_v15, %v539_v14  ;;  %v541_v17 = vmul.f32 %v720_v15, %v509_v52  ;;  %v542_v18 = vmul.f32 %v720_v15, %v512_v54 }
 0x378   :  { %v543_v19 = vadd.f32 %v541_v17, %v540_v16  ;;  %v544_v20 = vadd.f32 %v542_v18, %v540_v16 }
 0x37a   :  { %546 = vst [vmem:[#allocation10 + $0x8] sm:$0xff] %v544_v20  ;;  %545 = vst [vmem:[#allocation10] sm:$0xff] %v543_v19 }
 0x37b   :  { %820 = shalt.err (!%p817_p8)
}
 0x37c   :  { %s821_s16 = scalar_lea.hbm %s1042_s8, 256 }
 0x37d   :  { %p822_p9 = scmp.ne.s32.totalorder %s1042_s8, %s821_s16  ;;  %p825_p10 = scmp.lt.u32.totalorder %s821_s16, %s1042_s8 }
 0x37f   :  { %p827_p11 = pnand %p825_p10, %p822_p9 }
 0x381   :  { %830 = shalt.err (!%p827_p11)
}
 0x382   :  { %s848_s30 = smov 128   ;;  %s849_s22 = smov 8  }
 0x383   :  { %558 = dma.vmem_to_hbm [thread:$0]  %s553_s6, 256, %s1042_s8, [#allocation4], %s848_s30, %s848_s30, %s849_s22  }
 0x384   :  { %837 = dma.done.wait [#allocation4], 256  }
 0x385   :  { %838 = vsyncadd [#allocation4], 4294967040 }
 0x386   :  { %562 = vsyncpa [#allocation3], 1 }
 0x387   :  { %563 = vsyncpa [#allocation6], 1 }
 0x388   :  { %564 = vsyncpa [#allocation9], 1 }
 0x389   :  { %565 = vsyncpa [#allocation4], 1 }

</bundles_post_ra>
